<compile_context>
chip_gen: v7x
topology: tpu7x:2x2x1
jax: 0.10.0
libtpu: 0.0.40
codegen_flags: <defaults>
</compile_context>

<pallas_src>
import functools
import math

import jax
import jax.numpy as jnp
from jax.experimental import pallas as pl
from jax.experimental.pallas import tpu as pltpu


_TARGET_TILE_BYTES = 3 * 1024 * 1024  # ~3 MiB per x tile (review: 2-4 MiB sweet spot)


def _vmem_budget_bytes() -> int:
    """Generation-aware budget for in-flight pipeline buffers."""
    cap = 64 * 1024 * 1024  # conservative fallback (v7x per-core physical VMEM)
    try:
        cap = int(pltpu.get_tpu_info().vmem_capacity_bytes)
    except Exception:
        pass
    return max(8 * 1024 * 1024, min(cap // 3, 24 * 1024 * 1024))


def _choose_tiles(B: int, S: int, D: int, itemsize: int, budget: int):
    """Pick (batch_block, seq_tile) sized by bytes under the VMEM budget."""
    # dtype-dependent sublane multiple: f32 -> 8, bf16/f16 -> 16, int8/fp8 -> 32
    sub = max(8, 32 // itemsize)

    # In-flight VMEM per seq row: x + out (double-buffered) + f32 pe (double-buffered).
    row_io = D * itemsize * 4
    row_pe = D * 4 * 2

    target_rows = max(1, _TARGET_TILE_BYTES // (D * itemsize))
    budget_rows = max(1, budget // (row_io + row_pe))
    cap_rows = max(1, min(target_rows, budget_rows))

    if S <= cap_rows or S <= sub:
        ts = S  # whole sequence per step (full-extent block, no sublane constraint)
    else:
        ts = max(sub, (cap_rows // sub) * sub)  # sublane-aligned; ragged last block OK

    # If the whole sequence fits in one tile, block batch elements together so
    # each grid step still moves ~_TARGET_TILE_BYTES of data.
    bb = 1
    if ts == S and B > 1:
        tile_bytes = S * D * itemsize
        pe_bytes = S * D * 4 * 2
        by_target = max(1, _TARGET_TILE_BYTES // tile_bytes)
        by_budget = max(1, (budget - pe_bytes) // (4 * tile_bytes)) if budget > pe_bytes else 1
        bb = max(1, min(B, by_target, by_budget))
    return bb, ts


def _scale_add_kernel(x_ref, pe_ref, o_ref, *, scale):
    # x_ref / o_ref: (bb, ts, D) tile; pe_ref: (ts, D) float32 tile shared over batch.
    x = x_ref[...].astype(jnp.float32)
    pe = pe_ref[...]
    o_ref[...] = (x * scale + pe).astype(o_ref.dtype)


def positional_encoding_forward(embeddings: jax.Array, d_embed: int) -> jax.Array:
    B, S, D = embeddings.shape
    dtype = embeddings.dtype
    itemsize = jnp.dtype(dtype).itemsize

    budget = _vmem_budget_bytes()
    bb, ts = _choose_tiles(B, S, D, itemsize, budget)

    # One-time (S, D) float32 PE table (exact reference formula, incl. 2*i exponent).
    pos = jnp.arange(S, dtype=jnp.float32)[:, None]
    idx = jnp.arange(D, dtype=jnp.float32)[None, :]
    angle = pos / jnp.power(jnp.float32(10000.0), 2.0 * idx / d_embed)
    even = (jnp.arange(D) % 2 == 0)[None, :]
    pe = jnp.where(even, jnp.sin(angle), jnp.cos(angle)).astype(jnp.float32)

    kernel = functools.partial(_scale_add_kernel, scale=float(math.sqrt(d_embed)))

    # Grid: (seq_tiles, batch_blocks), batch innermost so the pe block index
    # (s, 0) is constant across the inner loop -> pe stays VMEM-resident and is
    # only re-fetched when the sequence tile changes.
    grid = (pl.cdiv(S, ts), pl.cdiv(B, bb))

    out = pl.pallas_call(
        kernel,
        out_shape=jax.ShapeDtypeStruct((B, S, D), dtype),
        grid_spec=pltpu.PrefetchScalarGridSpec(
            num_scalar_prefetch=0,
            grid=grid,
            in_specs=[
                pl.BlockSpec((bb, ts, D), lambda s, b: (b, s, 0)),
                pl.BlockSpec((ts, D), lambda s, b: (s, 0)),  # batch-invariant
            ],
            out_specs=pl.BlockSpec((bb, ts, D), lambda s, b: (b, s, 0)),
        ),
        compiler_params=pltpu.CompilerParams(
            dimension_semantics=("parallel", "parallel"),
            vmem_limit_bytes=int(min(2 * budget, 48 * 1024 * 1024)),
        ),
    )(embeddings, pe)
    return out


def _reference(embeddings: jnp.ndarray, d_embed: int) -> jnp.ndarray:
    # Pure-JAX reference mirroring the PyTorch loop semantics.
    B, S, D = embeddings.shape
    pos = jnp.arange(S, dtype=jnp.float32)[:, None]
    i = jnp.arange(D, dtype=jnp.float32)[None, :]
    angle = pos / jnp.power(10000.0, 2.0 * i / d_embed)
    pe = jnp.where((jnp.arange(D) % 2 == 0)[None, :], jnp.sin(angle), jnp.cos(angle))
    return embeddings * math.sqrt(d_embed) + pe[None]


if __name__ == "__main__":
    B, S, D = 2, 8, 32
    d_embed = D
    key = jax.random.PRNGKey(0)
    embeddings = jax.random.normal(key, (B, S, D), dtype=jnp.float32)

    out = positional_encoding_forward(embeddings, d_embed)
    out = jax.block_until_ready(out)

    ref = _reference(embeddings, d_embed)
    assert out.shape == (B, S, D)
    assert jnp.allclose(out, ref, atol=1e-5, rtol=1e-5)

    print("KERNEL_OK")
</pallas_src>

<mosaic_0001>
module attributes {stable_mosaic.version = 11 : i64} {
  func.func @_scale_add_kernel(%arg0: i32, %arg1: i32, %arg2: memref<2x8x32xf32, #tpu.memory_space<vmem>>, %arg3: memref<8x32xf32, #tpu.memory_space<vmem>>, %arg4: memref<2x8x32xf32, #tpu.memory_space<vmem>>) attributes {dimension_semantics = [#tpu.dimension_semantics<parallel>, #tpu.dimension_semantics<parallel>], iteration_bounds = array<i64: 1, 1>, scalar_prefetch = 0 : i64, scratch_operands = 0 : i64, tpu.core_type = #tpu.core_type<tc>, window_params = [{transform_indices = @transform_0, window_bounds = array<i64: 2, 8, 32>}, {transform_indices = @transform_1, window_bounds = array<i64: 8, 32>}, {transform_indices = @transform_2, window_bounds = array<i64: 2, 8, 32>}]} {
    %c0 = arith.constant 0 : index
    %c0_0 = arith.constant 0 : index
    %c0_1 = arith.constant 0 : index
    %0 = vector.load %arg2[%c0, %c0_0, %c0_1] : memref<2x8x32xf32, #tpu.memory_space<vmem>>, vector<2x8x32xf32>
    %c0_2 = arith.constant 0 : index
    %c0_3 = arith.constant 0 : index
    %1 = vector.load %arg3[%c0_2, %c0_3] : memref<8x32xf32, #tpu.memory_space<vmem>>, vector<8x32xf32>
    %cst = arith.constant 5.65685415 : f32
    %2 = vector.broadcast %cst : f32 to vector<2x8x32xf32>
    %3 = arith.mulf %0, %2 : vector<2x8x32xf32>
    %4 = vector.shape_cast %1 : vector<8x32xf32> to vector<1x8x32xf32>
    %5 = vector.broadcast %4 : vector<1x8x32xf32> to vector<2x8x32xf32>
    %6 = arith.addf %3, %5 : vector<2x8x32xf32>
    %c0_4 = arith.constant 0 : index
    %c0_5 = arith.constant 0 : index
    %c0_6 = arith.constant 0 : index
    %7 = vector.load %arg4[%c0_4, %c0_5, %c0_6] : memref<2x8x32xf32, #tpu.memory_space<vmem>>, vector<2x8x32xf32>
    tpu.vector_store %arg4[%c0_4, %c0_5, %c0_6], %6 {strides = array<i32>} : memref<2x8x32xf32, #tpu.memory_space<vmem>>, vector<2x8x32xf32>,
    return
  }
  func.func @transform_0(%arg0: i32, %arg1: i32) -> (i32, i32, i32) {
    %c0_i32 = arith.constant 0 : i32
    %c0_i32_0 = arith.constant 0 : i32
    return %arg1, %arg0, %c0_i32 : i32, i32, i32
  }
  func.func @transform_1(%arg0: i32, %arg1: i32) -> (i32, i32) {
    %c0_i32 = arith.constant 0 : i32
    %c0_i32_0 = arith.constant 0 : i32
    return %arg0, %c0_i32 : i32, i32
  }
  func.func @transform_2(%arg0: i32, %arg1: i32) -> (i32, i32, i32) {
    %c0_i32 = arith.constant 0 : i32
    %c0_i32_0 = arith.constant 0 : i32
    return %arg1, %arg0, %c0_i32 : i32, i32, i32
  }
}

</mosaic_0001>

<bundles_post_ra>
// kernel: tpu_custom_call.1
= control target key start
LH: loop header
LB: loop body
LE: loop exit
PB: predicated region body
PF: predicated region fallthrough
CT: control target
= control target key end

     0   :  { %7 = vsyncpa [#allocation3], 0  ;;  %s205_s0 = inlined_call_operand.hbm [shape: f32[2,8,32], index: 0, kind: input, shape index: {}]   ;;  %s206_s1 = inlined_call_operand.hbm [shape: f32[8,32], index: 1, kind: input, shape index: {}]   ;;  %s207_s2 = inlined_call_operand.hbm [shape: f32[2,8,32], index: 2, kind: output, shape index: {}]  }
   0x1   :  { %8 = vsyncpa [#allocation6], 0 }
   0x2   :  { %9 = vsyncpa [#allocation4], 0  ;;  %s143_s9 = smov [#allocation2]   ;;  %s71_s13 = scalar_lea.hbm %s205_s0, 256 }
   0x3   :  { %s15_s10 = sshll.u32 %s143_s9, 4  ;;  %p72_p0 = scmp.ne.s32.totalorder %s205_s0, %s71_s13  ;;  %s16_s10 = int_to_ptr.vmem [resolvable:$true] %s15_s10 }
   0x4   :  { %p75_p1 = scmp.lt.u32.totalorder %s71_s13, %s205_s0 }
   0x6   :  { %p77_p2 = pnand %p75_p1, %p72_p0 }
   0x8   :  { %80 = shalt.err (!%p77_p2)
}
   0x9   :  { %s81_s18 = scalar_lea.vmem %s16_s10, 256  ;;  %p86_p4 = scmp.lt.s32.totalorder %s16_s10, %s16_s10 }
   0xa   :  { %p82_p3 = scmp.ne.s32.totalorder %s16_s10, %s81_s18  ;;  %p87_p5 = scmp.lt.s32.totalorder %s81_s18, %s81_s18 }
   0xc   :  { %p88_p6 = por %p87_p5, %p86_p4 }
   0xe   :  { %p89_p7 = pnand %p88_p6, %p82_p3 }
  0x10   :  { %92 = shalt.err (!%p89_p7)
}
  0x11   :  { %s144_s19 = smov 128   ;;  %s145_s20 = smov 8  }
  0x12   :  { %21 = dma.hbm_to_vmem [thread:$0]  %s205_s0, 256, %s16_s10, [#allocation3], %s144_s19, %s144_s19, %s145_s20  }
  0x13   :  { %s146_s23 = smov [#allocation5]   ;;  %s93_s27 = scalar_lea.hbm %s206_s1, 128 }
  0x14   :  { %s28_s24 = sshll.u32 %s146_s23, 4  ;;  %p94_p8 = scmp.ne.s32.totalorder %s206_s1, %s93_s27  ;;  %s29_s24 = int_to_ptr.vmem [resolvable:$true] %s28_s24 }
  0x15   :  { %p97_p9 = scmp.lt.u32.totalorder %s93_s27, %s206_s1 }
  0x17   :  { %p99_p10 = pnand %p97_p9, %p94_p8 }
  0x19   :  { %102 = shalt.err (!%p99_p10)
}
  0x1a   :  { %s103_s4 = scalar_lea.vmem %s29_s24, 128  ;;  %p108_p12 = scmp.lt.s32.totalorder %s29_s24, %s29_s24 }
  0x1b   :  { %p104_p11 = scmp.ne.s32.totalorder %s29_s24, %s103_s4  ;;  %p109_p13 = scmp.lt.s32.totalorder %s103_s4, %s103_s4 }
  0x1d   :  { %p110_p0 = por %p109_p13, %p108_p12 }
  0x1f   :  { %p111_p1 = pnand %p110_p0, %p104_p11 }
  0x21   :  { %114 = shalt.err (!%p111_p1)
}
  0x22   :  { %31 = dma.hbm_to_vmem [thread:$0]  %s206_s1, 128, %s29_s24, [#allocation6]  }
  0x23   :  { %137 = dma.done.wait [#allocation3], 256  }
  0x24   :  { %138 = vsyncadd [#allocation3], 4294967040 }
  0x25   :  { %139 = dma.done.wait [#allocation6], 128  }
  0x26   :  { %140 = vsyncadd [#allocation6], 4294967168  ;;  %v38_v0 = vld [vmem:[#allocation2] sm:$0xff]  ;;  %v40_v1 = vld [vmem:[#allocation5] sm:$0xff]  ;;  %s147_s6 = smov [#allocation7]   ;;  %vm45_vm0 = vcmask 261120  }
  0x27   :  { %v39_v2 = vld [vmem:[#allocation2 + $0x8] sm:$0xff]  ;;  %s53_s7 = sshll.u32 %s147_s6, 4  ;;  %v41_v3 = vmul.f32 5.656854, %v38_v0  ;;  %s54_s7 = int_to_ptr.vmem [resolvable:$true] %s53_s7 }
  0x28   :  { %v42_v4 = vmul.f32 5.656854, %v39_v2  ;;  %s115_s8 = scalar_lea.vmem %s54_s7, 256  ;;  %p120_p3 = scmp.lt.s32.totalorder %s54_s7, %s54_s7 }
  0x29   :  { %v43_v5 = vadd.f32 %v41_v3, %v40_v1  ;;  %p116_p2 = scmp.ne.s32.totalorder %s54_s7, %s115_s8  ;;  %p121_p4 = scmp.lt.s32.totalorder %s115_s8, %s115_s8 }
  0x2a   :  { %v44_v6 = vadd.f32 %v42_v4, %v40_v1 }
  0x2b   :  { %46 = vst.msk [vmem:[#allocation7] sm:$0xff] %vm45_vm0, %v43_v5  ;;  %p122_p5 = por %p121_p4, %p120_p3 }
  0x2c   :  { %47 = vst.msk [vmem:[#allocation7 + $0x8] sm:$0xff] %vm45_vm0, %v44_v6 }
  0x2d   :  { %p123_p6 = pnand %p122_p5, %p116_p2 }
  0x2f   :  { %126 = shalt.err (!%p123_p6)
}
  0x30   :  { %s127_s10 = scalar_lea.hbm %s207_s2, 256 }
  0x31   :  { %p128_p7 = scmp.ne.s32.totalorder %s207_s2, %s127_s10  ;;  %p131_p8 = scmp.lt.u32.totalorder %s127_s10, %s207_s2 }
  0x33   :  { %p133_p9 = pnand %p131_p8, %p128_p7 }
  0x35   :  { %136 = shalt.err (!%p133_p9)
}
  0x36   :  { %59 = dma.vmem_to_hbm [thread:$0]  %s54_s7, 256, %s207_s2, [#allocation4], %s144_s19, %s144_s19, %s145_s20  }
  0x37   :  { %141 = dma.done.wait [#allocation4], 256  }
  0x38   :  { %142 = vsyncadd [#allocation4], 4294967040 }
  0x39   :  { %63 = vsyncpa [#allocation3], 1 }
  0x3a   :  { %64 = vsyncpa [#allocation6], 1 }
  0x3b   :  { %65 = vsyncpa [#allocation4], 1 }

</bundles_post_ra>
